<compile_context>
chip_gen: v6e
topology: v6e:2x2x1
jax: 0.10.0
libtpu: 0.0.40
codegen_flags: <defaults>
</compile_context>

<pallas_src>
import functools
import math

import jax
import jax.numpy as jnp
from jax import lax
from jax.experimental import pallas as pl
from jax.experimental.pallas import tpu as pltpu  # noqa: F401  (kept for TPU backend helpers)


# ----------------------------------------------------------------------------
# Fused Pallas kernel: whole forward (all batches, all heads) in one call.
# ----------------------------------------------------------------------------
def _fused_cross_attn_kernel(xq_ref, xkv_ref, w_ref, b_ref, o_ref, *, num_heads):
    """Cross-attention forward, single invocation.

    xq_ref : (Lq, N, E)  query-side input, seq-first (PyTorch MHA layout)
    xkv_ref: (Lk, N, E)  key/value-side input
    w_ref  : (E, 4E)     [Wq^T * scale | Wk^T | Wv^T | Wo^T]
    b_ref  : (1, 4E)     [bq * scale   | bk   | bv   | bo  ]
    o_ref  : (Lq, N*E)   lane-concatenated per-batch outputs
    """
    Lq, N, E = xq_ref.shape
    hd = E // num_heads

    xq = xq_ref[...]    # (Lq, N, E)
    xkv = xkv_ref[...]  # (Lk, N, E)
    w = w_ref[...]      # (E, 4E)
    b = b_ref[...]      # (1, 4E)

    wq = w[:, :E]            # (E, E)   scale pre-folded
    wkv = w[:, E:3 * E]      # (E, 2E)  fused [K | V] projection
    wo = w[:, 3 * E:]        # (E, E)
    bq = b[:, :E]
    bkv = b[:, E:3 * E]
    bo = b[:, 3 * E:]

    outs = []
    # N and H are tiny & static here, so plain Python loops are fine; at
    # realistic E/H switch to lax.fori_loop to bound q/k/v live ranges.
    for n in range(N):
        xq_n = xq[:, n, :]    # (Lq, E)
        xkv_n = xkv[:, n, :]  # (Lk, E)

        # Input projections (f32 accumulation on the MXU).
        q = jnp.dot(xq_n, wq, preferred_element_type=jnp.float32) + bq      # (Lq, E)
        kv = jnp.dot(xkv_n, wkv, preferred_element_type=jnp.float32) + bkv  # (Lk, 2E)
        k = kv[:, :E]
        v = kv[:, E:]

        heads = []
        for h in range(num_heads):
            sl = slice(h * hd, (h + 1) * hd)
            q_h = q[:, sl]   # (Lq, hd)
            k_h = k[:, sl]   # (Lk, hd)
            v_h = v[:, sl]   # (Lk, hd)

            # scores: contract last dims -> no explicit k.T materialization.
            s = lax.dot_general(
                q_h, k_h, (((1,), (1,)), ((), ())),
                preferred_element_type=jnp.float32,
            )  # (Lq, Lk)

            # softmax (f32, max-subtracted); reciprocal on the EUP slot.
            m = jnp.max(s, axis=-1, keepdims=True)
            p = jnp.exp(s - m)
            l = jnp.sum(p, axis=-1, keepdims=True)
            p = p * pl.reciprocal(l, approx=True)

            heads.append(
                jnp.dot(p, v_h, preferred_element_type=jnp.float32)
            )  # (Lq, hd)

        # Head merge = lane concat; ONE output-projection matmul per batch.
        o_heads = jnp.concatenate(heads, axis=1)                              # (Lq, E)
        out_n = jnp.dot(o_heads, wo, preferred_element_type=jnp.float32) + bo  # (Lq, E)
        outs.append(out_n)

    # self.dropout: identity in eval mode.  Single lane-concatenated store.
    o_ref[...] = jnp.concatenate(outs, axis=1).astype(o_ref.dtype)


# ----------------------------------------------------------------------------
# Module wrapper
# ----------------------------------------------------------------------------
def cross_attention_module(thesis_feature, llm_feature, params, num_heads):
    """Equivalent of Cross_Attention_Module.forward in eval mode.

    thesis_feature : (Lq, N, E)  -- query   (seq-first, like PyTorch MHA)
    llm_feature    : (Lk, N, E)  -- key and value
    returns        : (Lq, N, E)
    """
    Lq, N, E = thesis_feature.shape
    hd = E // num_heads
    scale = 1.0 / math.sqrt(hd)

    W = params["in_proj_weight"]   # (3E, E)
    b = params["in_proj_bias"]     # (3E,)

    # One-time weight prep: PyTorch Linear computes x @ W.T + b.  The softmax
    # scale is folded into Wq^T / bq (numerically identical to scaling q).
    w_packed = jnp.concatenate(
        [W[:E].T * scale, W[E:2 * E].T, W[2 * E:].T,
         params["out_proj_weight"].T],
        axis=1,
    )  # (E, 4E)
    b_packed = jnp.concatenate(
        [b[:E] * scale, b[E:2 * E], b[2 * E:], params["out_proj_bias"]]
    ).reshape(1, 4 * E)

    kernel = functools.partial(_fused_cross_attn_kernel, num_heads=num_heads)

    # Single invocation: no grid, whole arrays as VMEM blocks (everything is
    # a few KB).  Inputs stay seq-first -- no HBM transposes framing the call.
    out = pl.pallas_call(
        kernel,
        out_shape=jax.ShapeDtypeStruct((Lq, N * E), thesis_feature.dtype),
    )(thesis_feature, llm_feature, w_packed, b_packed)

    # (Lq, N*E) -> (Lq, N, E): contiguous reshape, no data movement.
    return out.reshape(Lq, N, E)


# ----------------------------------------------------------------------------
# Pure-JAX reference (for correctness check)
# ----------------------------------------------------------------------------
def reference(thesis_feature, llm_feature, params, num_heads):
    Lq, N, E = thesis_feature.shape
    Lk = llm_feature.shape[0]
    H = num_heads
    hd = E // H
    W = params["in_proj_weight"]
    b = params["in_proj_bias"]
    q = thesis_feature @ W[:E].T + b[:E]
    k = llm_feature @ W[E:2 * E].T + b[E:2 * E]
    v = llm_feature @ W[2 * E:].T + b[2 * E:]
    q = q.reshape(Lq, N * H, hd).transpose(1, 0, 2) / math.sqrt(hd)
    k = k.reshape(Lk, N * H, hd).transpose(1, 0, 2)
    v = v.reshape(Lk, N * H, hd).transpose(1, 0, 2)
    s = jnp.einsum("bqd,bkd->bqk", q, k)
    p = jax.nn.softmax(s, axis=-1)
    o = jnp.einsum("bqk,bkd->bqd", p, v)
    o = o.transpose(1, 0, 2).reshape(Lq, N, E)
    return o @ params["out_proj_weight"].T + params["out_proj_bias"]


# ----------------------------------------------------------------------------
if __name__ == "__main__":
    embed_dim = 32
    num_heads = 4
    Lq, Lk, N = 8, 8, 2  # query seq, key/value seq, batch

    key = jax.random.PRNGKey(0)
    k1, k2, k3, k4, k5, k6 = jax.random.split(key, 6)

    # Deterministic parameter init (shapes from nn.MultiheadAttention.__init__)
    params = {
        "in_proj_weight": jax.random.normal(
            k1, (3 * embed_dim, embed_dim), jnp.float32
        ) * 0.1,
        "in_proj_bias": jax.random.normal(k2, (3 * embed_dim,), jnp.float32) * 0.1,
        "out_proj_weight": jax.random.normal(
            k3, (embed_dim, embed_dim), jnp.float32
        ) * 0.1,
        "out_proj_bias": jax.random.normal(k4, (embed_dim,), jnp.float32) * 0.1,
    }

    thesis_feature = jax.random.normal(k5, (Lq, N, embed_dim), jnp.float32)
    llm_feature = jax.random.normal(k6, (Lk, N, embed_dim), jnp.float32)

    out = cross_attention_module(thesis_feature, llm_feature, params, num_heads)
    out = jax.block_until_ready(out)

    ref = reference(thesis_feature, llm_feature, params, num_heads)
    assert out.shape == (Lq, N, embed_dim)
    # Tolerance 2e-3: approx (EUP) reciprocal in the softmax trades ~1e-4
    # relative error for a free divide.
    assert jnp.allclose(out, ref, atol=2e-3, rtol=2e-3), "mismatch vs reference"

    print("KERNEL_OK")
</pallas_src>

<mosaic_0001>
module attributes {stable_mosaic.version = 11 : i64} {
  func.func @_fused_cross_attn_kernel(%arg0: memref<8x2x32xf32, #tpu.memory_space<vmem>>, %arg1: memref<8x2x32xf32, #tpu.memory_space<vmem>>, %arg2: memref<32x128xf32, #tpu.memory_space<vmem>>, %arg3: memref<1x128xf32, #tpu.memory_space<vmem>>, %arg4: memref<8x64xf32, #tpu.memory_space<vmem>>) attributes {dimension_semantics = [], scalar_prefetch = 0 : i64, scratch_operands = 0 : i64, tpu.core_type = #tpu.core_type<tc>} {
    %c0 = arith.constant 0 : index
    %c0_0 = arith.constant 0 : index
    %c0_1 = arith.constant 0 : index
    %0 = vector.load %arg0[%c0, %c0_0, %c0_1] : memref<8x2x32xf32, #tpu.memory_space<vmem>>, vector<8x2x32xf32>
    %c0_2 = arith.constant 0 : index
    %c0_3 = arith.constant 0 : index
    %c0_4 = arith.constant 0 : index
    %1 = vector.load %arg1[%c0_2, %c0_3, %c0_4] : memref<8x2x32xf32, #tpu.memory_space<vmem>>, vector<8x2x32xf32>
    %c0_5 = arith.constant 0 : index
    %c0_6 = arith.constant 0 : index
    %2 = vector.load %arg2[%c0_5, %c0_6] : memref<32x128xf32, #tpu.memory_space<vmem>>, vector<32x128xf32>
    %c0_7 = arith.constant 0 : index
    %c0_8 = arith.constant 0 : index
    %3 = vector.load %arg3[%c0_7, %c0_8] : memref<1x128xf32, #tpu.memory_space<vmem>>, vector<1x128xf32>
    %4 = vector.extract_strided_slice %2 {offsets = [0, 0], sizes = [32, 32], strides = [1, 1]} : vector<32x128xf32> to vector<32x32xf32>
    %5 = vector.extract_strided_slice %2 {offsets = [0, 32], sizes = [32, 64], strides = [1, 1]} : vector<32x128xf32> to vector<32x64xf32>
    %6 = vector.extract_strided_slice %2 {offsets = [0, 96], sizes = [32, 32], strides = [1, 1]} : vector<32x128xf32> to vector<32x32xf32>
    %7 = vector.extract_strided_slice %3 {offsets = [0, 0], sizes = [1, 32], strides = [1, 1]} : vector<1x128xf32> to vector<1x32xf32>
    %8 = vector.extract_strided_slice %3 {offsets = [0, 32], sizes = [1, 64], strides = [1, 1]} : vector<1x128xf32> to vector<1x64xf32>
    %9 = vector.extract_strided_slice %3 {offsets = [0, 96], sizes = [1, 32], strides = [1, 1]} : vector<1x128xf32> to vector<1x32xf32>
    %10 = vector.extract_strided_slice %0 {offsets = [0, 0, 0], sizes = [8, 1, 32], strides = [1, 1, 1]} : vector<8x2x32xf32> to vector<8x1x32xf32>
    %11 = vector.shape_cast %10 : vector<8x1x32xf32> to vector<8x32xf32>
    %12 = vector.extract_strided_slice %1 {offsets = [0, 0, 0], sizes = [8, 1, 32], strides = [1, 1, 1]} : vector<8x2x32xf32> to vector<8x1x32xf32>
    %13 = vector.shape_cast %12 : vector<8x1x32xf32> to vector<8x32xf32>
    %cst = arith.constant dense<0.000000e+00> : vector<8x32xf32>
    %14 = tpu.matmul %11, %4, %cst {dimension_numbers = #tpu.dot_dimension_numbers<[1], [0], [0], [1], [0, 0, 1, 1], [], []>} : vector<8x32xf32>, vector<32x32xf32>, vector<8x32xf32> -> vector<8x32xf32>
    %15 = vector.broadcast %7 : vector<1x32xf32> to vector<8x32xf32>
    %16 = arith.addf %14, %15 : vector<8x32xf32>
    %cst_9 = arith.constant dense<0.000000e+00> : vector<8x64xf32>
    %17 = tpu.matmul %13, %5, %cst_9 {dimension_numbers = #tpu.dot_dimension_numbers<[1], [0], [0], [1], [0, 0, 1, 1], [], []>} : vector<8x32xf32>, vector<32x64xf32>, vector<8x64xf32> -> vector<8x64xf32>
    %18 = vector.broadcast %8 : vector<1x64xf32> to vector<8x64xf32>
    %19 = arith.addf %17, %18 : vector<8x64xf32>
    %20 = vector.extract_strided_slice %19 {offsets = [0, 0], sizes = [8, 32], strides = [1, 1]} : vector<8x64xf32> to vector<8x32xf32>
    %21 = vector.extract_strided_slice %19 {offsets = [0, 32], sizes = [8, 32], strides = [1, 1]} : vector<8x64xf32> to vector<8x32xf32>
    %22 = vector.extract_strided_slice %16 {offsets = [0, 0], sizes = [8, 8], strides = [1, 1]} : vector<8x32xf32> to vector<8x8xf32>
    %23 = vector.extract_strided_slice %20 {offsets = [0, 0], sizes = [8, 8], strides = [1, 1]} : vector<8x32xf32> to vector<8x8xf32>
    %24 = vector.extract_strided_slice %21 {offsets = [0, 0], sizes = [8, 8], strides = [1, 1]} : vector<8x32xf32> to vector<8x8xf32>
    %cst_10 = arith.constant dense<0.000000e+00> : vector<8x8xf32>
    %25 = tpu.matmul %22, %23, %cst_10 {dimension_numbers = #tpu.dot_dimension_numbers<[1], [1], [0], [0], [0, 0, 1, 0], [], []>} : vector<8x8xf32>, vector<8x8xf32>, vector<8x8xf32> -> vector<8x8xf32>
    %cst_11 = arith.constant dense<0xFF800000> : vector<8xf32>
    %26 = vector.multi_reduction <maximumf>, %25, %cst_11 [1] : vector<8x8xf32> to vector<8xf32>
    %27 = vector.shape_cast %26 : vector<8xf32> to vector<8x1xf32>
    %28 = vector.broadcast %27 : vector<8x1xf32> to vector<8x8xf32>
    %29 = arith.subf %25, %28 : vector<8x8xf32>
    %30 = math.exp %29 : vector<8x8xf32>
    %cst_12 = arith.constant dense<0.000000e+00> : vector<8xf32>
    %31 = vector.multi_reduction <add>, %30, %cst_12 [1] : vector<8x8xf32> to vector<8xf32>
    %32 = vector.shape_cast %31 : vector<8xf32> to vector<8x1xf32>
    %33 = tpu.reciprocal %32 {approx = true} : vector<8x1xf32> -> vector<8x1xf32>
    %34 = vector.broadcast %33 : vector<8x1xf32> to vector<8x8xf32>
    %35 = arith.mulf %30, %34 : vector<8x8xf32>
    %cst_13 = arith.constant dense<0.000000e+00> : vector<8x8xf32>
    %36 = tpu.matmul %35, %24, %cst_13 {dimension_numbers = #tpu.dot_dimension_numbers<[1], [0], [0], [1], [0, 0, 1, 1], [], []>} : vector<8x8xf32>, vector<8x8xf32>, vector<8x8xf32> -> vector<8x8xf32>
    %37 = vector.extract_strided_slice %16 {offsets = [0, 8], sizes = [8, 8], strides = [1, 1]} : vector<8x32xf32> to vector<8x8xf32>
    %38 = vector.extract_strided_slice %20 {offsets = [0, 8], sizes = [8, 8], strides = [1, 1]} : vector<8x32xf32> to vector<8x8xf32>
    %39 = vector.extract_strided_slice %21 {offsets = [0, 8], sizes = [8, 8], strides = [1, 1]} : vector<8x32xf32> to vector<8x8xf32>
    %cst_14 = arith.constant dense<0.000000e+00> : vector<8x8xf32>
    %40 = tpu.matmul %37, %38, %cst_14 {dimension_numbers = #tpu.dot_dimension_numbers<[1], [1], [0], [0], [0, 0, 1, 0], [], []>} : vector<8x8xf32>, vector<8x8xf32>, vector<8x8xf32> -> vector<8x8xf32>
    %cst_15 = arith.constant dense<0xFF800000> : vector<8xf32>
    %41 = vector.multi_reduction <maximumf>, %40, %cst_15 [1] : vector<8x8xf32> to vector<8xf32>
    %42 = vector.shape_cast %41 : vector<8xf32> to vector<8x1xf32>
    %43 = vector.broadcast %42 : vector<8x1xf32> to vector<8x8xf32>
    %44 = arith.subf %40, %43 : vector<8x8xf32>
    %45 = math.exp %44 : vector<8x8xf32>
    %cst_16 = arith.constant dense<0.000000e+00> : vector<8xf32>
    %46 = vector.multi_reduction <add>, %45, %cst_16 [1] : vector<8x8xf32> to vector<8xf32>
    %47 = vector.shape_cast %46 : vector<8xf32> to vector<8x1xf32>
    %48 = tpu.reciprocal %47 {approx = true} : vector<8x1xf32> -> vector<8x1xf32>
    %49 = vector.broadcast %48 : vector<8x1xf32> to vector<8x8xf32>
    %50 = arith.mulf %45, %49 : vector<8x8xf32>
    %cst_17 = arith.constant dense<0.000000e+00> : vector<8x8xf32>
    %51 = tpu.matmul %50, %39, %cst_17 {dimension_numbers = #tpu.dot_dimension_numbers<[1], [0], [0], [1], [0, 0, 1, 1], [], []>} : vector<8x8xf32>, vector<8x8xf32>, vector<8x8xf32> -> vector<8x8xf32>
    %52 = vector.extract_strided_slice %16 {offsets = [0, 16], sizes = [8, 8], strides = [1, 1]} : vector<8x32xf32> to vector<8x8xf32>
    %53 = vector.extract_strided_slice %20 {offsets = [0, 16], sizes = [8, 8], strides = [1, 1]} : vector<8x32xf32> to vector<8x8xf32>
    %54 = vector.extract_strided_slice %21 {offsets = [0, 16], sizes = [8, 8], strides = [1, 1]} : vector<8x32xf32> to vector<8x8xf32>
    %cst_18 = arith.constant dense<0.000000e+00> : vector<8x8xf32>
    %55 = tpu.matmul %52, %53, %cst_18 {dimension_numbers = #tpu.dot_dimension_numbers<[1], [1], [0], [0], [0, 0, 1, 0], [], []>} : vector<8x8xf32>, vector<8x8xf32>, vector<8x8xf32> -> vector<8x8xf32>
    %cst_19 = arith.constant dense<0xFF800000> : vector<8xf32>
    %56 = vector.multi_reduction <maximumf>, %55, %cst_19 [1] : vector<8x8xf32> to vector<8xf32>
    %57 = vector.shape_cast %56 : vector<8xf32> to vector<8x1xf32>
    %58 = vector.broadcast %57 : vector<8x1xf32> to vector<8x8xf32>
    %59 = arith.subf %55, %58 : vector<8x8xf32>
    %60 = math.exp %59 : vector<8x8xf32>
    %cst_20 = arith.constant dense<0.000000e+00> : vector<8xf32>
    %61 = vector.multi_reduction <add>, %60, %cst_20 [1] : vector<8x8xf32> to vector<8xf32>
    %62 = vector.shape_cast %61 : vector<8xf32> to vector<8x1xf32>
    %63 = tpu.reciprocal %62 {approx = true} : vector<8x1xf32> -> vector<8x1xf32>
    %64 = vector.broadcast %63 : vector<8x1xf32> to vector<8x8xf32>
    %65 = arith.mulf %60, %64 : vector<8x8xf32>
    %cst_21 = arith.constant dense<0.000000e+00> : vector<8x8xf32>
    %66 = tpu.matmul %65, %54, %cst_21 {dimension_numbers = #tpu.dot_dimension_numbers<[1], [0], [0], [1], [0, 0, 1, 1], [], []>} : vector<8x8xf32>, vector<8x8xf32>, vector<8x8xf32> -> vector<8x8xf32>
    %67 = vector.extract_strided_slice %16 {offsets = [0, 24], sizes = [8, 8], strides = [1, 1]} : vector<8x32xf32> to vector<8x8xf32>
    %68 = vector.extract_strided_slice %20 {offsets = [0, 24], sizes = [8, 8], strides = [1, 1]} : vector<8x32xf32> to vector<8x8xf32>
    %69 = vector.extract_strided_slice %21 {offsets = [0, 24], sizes = [8, 8], strides = [1, 1]} : vector<8x32xf32> to vector<8x8xf32>
    %cst_22 = arith.constant dense<0.000000e+00> : vector<8x8xf32>
    %70 = tpu.matmul %67, %68, %cst_22 {dimension_numbers = #tpu.dot_dimension_numbers<[1], [1], [0], [0], [0, 0, 1, 0], [], []>} : vector<8x8xf32>, vector<8x8xf32>, vector<8x8xf32> -> vector<8x8xf32>
    %cst_23 = arith.constant dense<0xFF800000> : vector<8xf32>
    %71 = vector.multi_reduction <maximumf>, %70, %cst_23 [1] : vector<8x8xf32> to vector<8xf32>
    %72 = vector.shape_cast %71 : vector<8xf32> to vector<8x1xf32>
    %73 = vector.broadcast %72 : vector<8x1xf32> to vector<8x8xf32>
    %74 = arith.subf %70, %73 : vector<8x8xf32>
    %75 = math.exp %74 : vector<8x8xf32>
    %cst_24 = arith.constant dense<0.000000e+00> : vector<8xf32>
    %76 = vector.multi_reduction <add>, %75, %cst_24 [1] : vector<8x8xf32> to vector<8xf32>
    %77 = vector.shape_cast %76 : vector<8xf32> to vector<8x1xf32>
    %78 = tpu.reciprocal %77 {approx = true} : vector<8x1xf32> -> vector<8x1xf32>
    %79 = vector.broadcast %78 : vector<8x1xf32> to vector<8x8xf32>
    %80 = arith.mulf %75, %79 : vector<8x8xf32>
    %cst_25 = arith.constant dense<0.000000e+00> : vector<8x8xf32>
    %81 = tpu.matmul %80, %69, %cst_25 {dimension_numbers = #tpu.dot_dimension_numbers<[1], [0], [0], [1], [0, 0, 1, 1], [], []>} : vector<8x8xf32>, vector<8x8xf32>, vector<8x8xf32> -> vector<8x8xf32>
    %82 = tpu.concatenate %36, %51, %66, %81 in 1 : vector<8x8xf32>, vector<8x8xf32>, vector<8x8xf32>, vector<8x8xf32> -> vector<8x32xf32>
    %cst_26 = arith.constant dense<0.000000e+00> : vector<8x32xf32>
    %83 = tpu.matmul %82, %6, %cst_26 {dimension_numbers = #tpu.dot_dimension_numbers<[1], [0], [0], [1], [0, 0, 1, 1], [], []>} : vector<8x32xf32>, vector<32x32xf32>, vector<8x32xf32> -> vector<8x32xf32>
    %84 = vector.broadcast %9 : vector<1x32xf32> to vector<8x32xf32>
    %85 = arith.addf %83, %84 : vector<8x32xf32>
    %86 = vector.extract_strided_slice %0 {offsets = [0, 1, 0], sizes = [8, 1, 32], strides = [1, 1, 1]} : vector<8x2x32xf32> to vector<8x1x32xf32>
    %87 = vector.shape_cast %86 : vector<8x1x32xf32> to vector<8x32xf32>
    %88 = vector.extract_strided_slice %1 {offsets = [0, 1, 0], sizes = [8, 1, 32], strides = [1, 1, 1]} : vector<8x2x32xf32> to vector<8x1x32xf32>
    %89 = vector.shape_cast %88 : vector<8x1x32xf32> to vector<8x32xf32>
    %cst_27 = arith.constant dense<0.000000e+00> : vector<8x32xf32>
    %90 = tpu.matmul %87, %4, %cst_27 {dimension_numbers = #tpu.dot_dimension_numbers<[1], [0], [0], [1], [0, 0, 1, 1], [], []>} : vector<8x32xf32>, vector<32x32xf32>, vector<8x32xf32> -> vector<8x32xf32>
    %91 = vector.broadcast %7 : vector<1x32xf32> to vector<8x32xf32>
    %92 = arith.addf %90, %91 : vector<8x32xf32>
    %cst_28 = arith.constant dense<0.000000e+00> : vector<8x64xf32>
    %93 = tpu.matmul %89, %5, %cst_28 {dimension_numbers = #tpu.dot_dimension_numbers<[1], [0], [0], [1], [0, 0, 1, 1], [], []>} : vector<8x32xf32>, vector<32x64xf32>, vector<8x64xf32> -> vector<8x64xf32>
    %94 = vector.broadcast %8 : vector<1x64xf32> to vector<8x64xf32>
    %95 = arith.addf %93, %94 : vector<8x64xf32>
    %96 = vector.extract_strided_slice %95 {offsets = [0, 0], sizes = [8, 32], strides = [1, 1]} : vector<8x64xf32> to vector<8x32xf32>
    %97 = vector.extract_strided_slice %95 {offsets = [0, 32], sizes = [8, 32], strides = [1, 1]} : vector<8x64xf32> to vector<8x32xf32>
    %98 = vector.extract_strided_slice %92 {offsets = [0, 0], sizes = [8, 8], strides = [1, 1]} : vector<8x32xf32> to vector<8x8xf32>
    %99 = vector.extract_strided_slice %96 {offsets = [0, 0], sizes = [8, 8], strides = [1, 1]} : vector<8x32xf32> to vector<8x8xf32>
    %100 = vector.extract_strided_slice %97 {offsets = [0, 0], sizes = [8, 8], strides = [1, 1]} : vector<8x32xf32> to vector<8x8xf32>
    %cst_29 = arith.constant dense<0.000000e+00> : vector<8x8xf32>
    %101 = tpu.matmul %98, %99, %cst_29 {dimension_numbers = #tpu.dot_dimension_numbers<[1], [1], [0], [0], [0, 0, 1, 0], [], []>} : vector<8x8xf32>, vector<8x8xf32>, vector<8x8xf32> -> vector<8x8xf32>
    %cst_30 = arith.constant dense<0xFF800000> : vector<8xf32>
    %102 = vector.multi_reduction <maximumf>, %101, %cst_30 [1] : vector<8x8xf32> to vector<8xf32>
    %103 = vector.shape_cast %102 : vector<8xf32> to vector<8x1xf32>
    %104 = vector.broadcast %103 : vector<8x1xf32> to vector<8x8xf32>
    %105 = arith.subf %101, %104 : vector<8x8xf32>
    %106 = math.exp %105 : vector<8x8xf32>
    %cst_31 = arith.constant dense<0.000000e+00> : vector<8xf32>
    %107 = vector.multi_reduction <add>, %106, %cst_31 [1] : vector<8x8xf32> to vector<8xf32>
    %108 = vector.shape_cast %107 : vector<8xf32> to vector<8x1xf32>
    %109 = tpu.reciprocal %108 {approx = true} : vector<8x1xf32> -> vector<8x1xf32>
    %110 = vector.broadcast %109 : vector<8x1xf32> to vector<8x8xf32>
    %111 = arith.mulf %106, %110 : vector<8x8xf32>
    %cst_32 = arith.constant dense<0.000000e+00> : vector<8x8xf32>
    %112 = tpu.matmul %111, %100, %cst_32 {dimension_numbers = #tpu.dot_dimension_numbers<[1], [0], [0], [1], [0, 0, 1, 1], [], []>} : vector<8x8xf32>, vector<8x8xf32>, vector<8x8xf32> -> vector<8x8xf32>
    %113 = vector.extract_strided_slice %92 {offsets = [0, 8], sizes = [8, 8], strides = [1, 1]} : vector<8x32xf32> to vector<8x8xf32>
    %114 = vector.extract_strided_slice %96 {offsets = [0, 8], sizes = [8, 8], strides = [1, 1]} : vector<8x32xf32> to vector<8x8xf32>
    %115 = vector.extract_strided_slice %97 {offsets = [0, 8], sizes = [8, 8], strides = [1, 1]} : vector<8x32xf32> to vector<8x8xf32>
    %cst_33 = arith.constant dense<0.000000e+00> : vector<8x8xf32>
    %116 = tpu.matmul %113, %114, %cst_33 {dimension_numbers = #tpu.dot_dimension_numbers<[1], [1], [0], [0], [0, 0, 1, 0], [], []>} : vector<8x8xf32>, vector<8x8xf32>, vector<8x8xf32> -> vector<8x8xf32>
    %cst_34 = arith.constant dense<0xFF800000> : vector<8xf32>
    %117 = vector.multi_reduction <maximumf>, %116, %cst_34 [1] : vector<8x8xf32> to vector<8xf32>
    %118 = vector.shape_cast %117 : vector<8xf32> to vector<8x1xf32>
    %119 = vector.broadcast %118 : vector<8x1xf32> to vector<8x8xf32>
    %120 = arith.subf %116, %119 : vector<8x8xf32>
    %121 = math.exp %120 : vector<8x8xf32>
    %cst_35 = arith.constant dense<0.000000e+00> : vector<8xf32>
    %122 = vector.multi_reduction <add>, %121, %cst_35 [1] : vector<8x8xf32> to vector<8xf32>
    %123 = vector.shape_cast %122 : vector<8xf32> to vector<8x1xf32>
    %124 = tpu.reciprocal %123 {approx = true} : vector<8x1xf32> -> vector<8x1xf32>
    %125 = vector.broadcast %124 : vector<8x1xf32> to vector<8x8xf32>
    %126 = arith.mulf %121, %125 : vector<8x8xf32>
    %cst_36 = arith.constant dense<0.000000e+00> : vector<8x8xf32>
    %127 = tpu.matmul %126, %115, %cst_36 {dimension_numbers = #tpu.dot_dimension_numbers<[1], [0], [0], [1], [0, 0, 1, 1], [], []>} : vector<8x8xf32>, vector<8x8xf32>, vector<8x8xf32> -> vector<8x8xf32>
    %128 = vector.extract_strided_slice %92 {offsets = [0, 16], sizes = [8, 8], strides = [1, 1]} : vector<8x32xf32> to vector<8x8xf32>
    %129 = vector.extract_strided_slice %96 {offsets = [0, 16], sizes = [8, 8], strides = [1, 1]} : vector<8x32xf32> to vector<8x8xf32>
    %130 = vector.extract_strided_slice %97 {offsets = [0, 16], sizes = [8, 8], strides = [1, 1]} : vector<8x32xf32> to vector<8x8xf32>
    %cst_37 = arith.constant dense<0.000000e+00> : vector<8x8xf32>
    %131 = tpu.matmul %128, %129, %cst_37 {dimension_numbers = #tpu.dot_dimension_numbers<[1], [1], [0], [0], [0, 0, 1, 0], [], []>} : vector<8x8xf32>, vector<8x8xf32>, vector<8x8xf32> -> vector<8x8xf32>
    %cst_38 = arith.constant dense<0xFF800000> : vector<8xf32>
    %132 = vector.multi_reduction <maximumf>, %131, %cst_38 [1] : vector<8x8xf32> to vector<8xf32>
    %133 = vector.shape_cast %132 : vector<8xf32> to vector<8x1xf32>
    %134 = vector.broadcast %133 : vector<8x1xf32> to vector<8x8xf32>
    %135 = arith.subf %131, %134 : vector<8x8xf32>
    %136 = math.exp %135 : vector<8x8xf32>
    %cst_39 = arith.constant dense<0.000000e+00> : vector<8xf32>
    %137 = vector.multi_reduction <add>, %136, %cst_39 [1] : vector<8x8xf32> to vector<8xf32>
    %138 = vector.shape_cast %137 : vector<8xf32> to vector<8x1xf32>
    %139 = tpu.reciprocal %138 {approx = true} : vector<8x1xf32> -> vector<8x1xf32>
    %140 = vector.broadcast %139 : vector<8x1xf32> to vector<8x8xf32>
    %141 = arith.mulf %136, %140 : vector<8x8xf32>
    %cst_40 = arith.constant dense<0.000000e+00> : vector<8x8xf32>
    %142 = tpu.matmul %141, %130, %cst_40 {dimension_numbers = #tpu.dot_dimension_numbers<[1], [0], [0], [1], [0, 0, 1, 1], [], []>} : vector<8x8xf32>, vector<8x8xf32>, vector<8x8xf32> -> vector<8x8xf32>
    %143 = vector.extract_strided_slice %92 {offsets = [0, 24], sizes = [8, 8], strides = [1, 1]} : vector<8x32xf32> to vector<8x8xf32>
    %144 = vector.extract_strided_slice %96 {offsets = [0, 24], sizes = [8, 8], strides = [1, 1]} : vector<8x32xf32> to vector<8x8xf32>
    %145 = vector.extract_strided_slice %97 {offsets = [0, 24], sizes = [8, 8], strides = [1, 1]} : vector<8x32xf32> to vector<8x8xf32>
    %cst_41 = arith.constant dense<0.000000e+00> : vector<8x8xf32>
    %146 = tpu.matmul %143, %144, %cst_41 {dimension_numbers = #tpu.dot_dimension_numbers<[1], [1], [0], [0], [0, 0, 1, 0], [], []>} : vector<8x8xf32>, vector<8x8xf32>, vector<8x8xf32> -> vector<8x8xf32>
    %cst_42 = arith.constant dense<0xFF800000> : vector<8xf32>
    %147 = vector.multi_reduction <maximumf>, %146, %cst_42 [1] : vector<8x8xf32> to vector<8xf32>
    %148 = vector.shape_cast %147 : vector<8xf32> to vector<8x1xf32>
    %149 = vector.broadcast %148 : vector<8x1xf32> to vector<8x8xf32>
    %150 = arith.subf %146, %149 : vector<8x8xf32>
    %151 = math.exp %150 : vector<8x8xf32>
    %cst_43 = arith.constant dense<0.000000e+00> : vector<8xf32>
    %152 = vector.multi_reduction <add>, %151, %cst_43 [1] : vector<8x8xf32> to vector<8xf32>
    %153 = vector.shape_cast %152 : vector<8xf32> to vector<8x1xf32>
    %154 = tpu.reciprocal %153 {approx = true} : vector<8x1xf32> -> vector<8x1xf32>
    %155 = vector.broadcast %154 : vector<8x1xf32> to vector<8x8xf32>
    %156 = arith.mulf %151, %155 : vector<8x8xf32>
    %cst_44 = arith.constant dense<0.000000e+00> : vector<8x8xf32>
    %157 = tpu.matmul %156, %145, %cst_44 {dimension_numbers = #tpu.dot_dimension_numbers<[1], [0], [0], [1], [0, 0, 1, 1], [], []>} : vector<8x8xf32>, vector<8x8xf32>, vector<8x8xf32> -> vector<8x8xf32>
    %158 = tpu.concatenate %112, %127, %142, %157 in 1 : vector<8x8xf32>, vector<8x8xf32>, vector<8x8xf32>, vector<8x8xf32> -> vector<8x32xf32>
    %cst_45 = arith.constant dense<0.000000e+00> : vector<8x32xf32>
    %159 = tpu.matmul %158, %6, %cst_45 {dimension_numbers = #tpu.dot_dimension_numbers<[1], [0], [0], [1], [0, 0, 1, 1], [], []>} : vector<8x32xf32>, vector<32x32xf32>, vector<8x32xf32> -> vector<8x32xf32>
    %160 = vector.broadcast %9 : vector<1x32xf32> to vector<8x32xf32>
    %161 = arith.addf %159, %160 : vector<8x32xf32>
    %162 = tpu.concatenate %85, %161 in 1 : vector<8x32xf32>, vector<8x32xf32> -> vector<8x64xf32>
    %c0_46 = arith.constant 0 : index
    %c0_47 = arith.constant 0 : index
    %163 = vector.load %arg4[%c0_46, %c0_47] : memref<8x64xf32, #tpu.memory_space<vmem>>, vector<8x64xf32>
    tpu.vector_store %arg4[%c0_46, %c0_47], %162 {strides = array<i32>} : memref<8x64xf32, #tpu.memory_space<vmem>>, vector<8x64xf32>,
    return
  }
}

</mosaic_0001>

<bundles_post_ra>
// kernel: tpu_custom_call.1
= control target key start
LH: loop header
LB: loop body
LE: loop exit
PB: predicated region body
PF: predicated region fallthrough
CT: control target
= control target key end

     0   :  { %9 = vsyncpa [#allocation3], 0  ;;  %s2797_s0 = inlined_call_operand.hbm [shape: f32[8,2,32], index: 0, kind: input, shape index: {}]   ;;  %s2798_s1 = inlined_call_operand.hbm [shape: f32[8,2,32], index: 1, kind: input, shape index: {}]   ;;  %s2799_s2 = inlined_call_operand.hbm [shape: f32[32,128], index: 2, kind: input, shape index: {}]   ;;  %s2800_s3 = inlined_call_operand.vmem [shape: f32[1,128], index: 3, kind: input, shape index: {}]   ;;  %s2801_s4 = inlined_call_operand.hbm [shape: f32[8,64], index: 4, kind: output, shape index: {}]  }
   0x1   :  { %10 = vsyncpa [#allocation6], 0 }
   0x2   :  { %11 = vsyncpa [#allocation4], 0  ;;  %s2382_s15 = smov [#allocation5]   ;;  %s2383_s17 = smov [#allocation2]  }
   0x3   :  { %s29_s16 = sshll.u32 %s2382_s15, 4  ;;  %s17_s18 = sshll.u32 %s2383_s17, 4  ;;  %s30_s16 = int_to_ptr.vmem [resolvable:$true] %s29_s16  ;;  %s18_s18 = int_to_ptr.vmem [resolvable:$true] %s17_s18 }
   0x4   :  { %s2304_s19 = scalar_lea.vmem %s30_s16, 256  ;;  %p2309_p1 = scmp.lt.s32.totalorder %s30_s16, %s30_s16 }
   0x5   :  { %p2305_p0 = scmp.ne.s32.totalorder %s30_s16, %s2304_s19  ;;  %p2310_p2 = scmp.lt.s32.totalorder %s2304_s19, %s2304_s19 }
   0x7   :  { %p2311_p3 = por %p2310_p2, %p2309_p1 }
   0x9   :  { %p2312_p4 = pnand %p2311_p3, %p2305_p0 }
   0xb   :  { %2315 = shalt.err (!%p2312_p4)
}
   0xc   :  { %s2384_s20 = smov 32   ;;  %s2385_s21 = smov 2  }
   0xd   :  { %35 = dma.hbm_to_vmem [thread:$0]  %s2798_s1, 256, %s30_s16, [#allocation6], %s2384_s20, %s2384_s20, %s2385_s21  }
   0xe   :  { %s2324_s24 = scalar_lea.vmem %s18_s18, 256  ;;  %p2329_p6 = scmp.lt.s32.totalorder %s18_s18, %s18_s18 }
   0xf   :  { %p2325_p5 = scmp.ne.s32.totalorder %s18_s18, %s2324_s24  ;;  %p2330_p7 = scmp.lt.s32.totalorder %s2324_s24, %s2324_s24 }
  0x11   :  { %p2331_p8 = por %p2330_p7, %p2329_p6 }
  0x13   :  { %p2332_p9 = pnand %p2331_p8, %p2325_p5 }
  0x15   :  { %2335 = shalt.err (!%p2332_p9)
}
  0x16   :  { %23 = dma.hbm_to_vmem [thread:$0]  %s2797_s0, 256, %s18_s18, [#allocation3], %s2384_s20, %s2384_s20, %s2385_s21  }
  0x17   :  { %s2386_s27 = smov [#allocation7]  }
  0x18   :  { %s41_s28 = sshll.u32 %s2386_s27, 4  ;;  %s42_s28 = int_to_ptr.vmem [resolvable:$true] %s41_s28 }
  0x19   :  { %s2344_s29 = scalar_lea.vmem %s42_s28, 512  ;;  %p2349_p11 = scmp.lt.s32.totalorder %s42_s28, %s42_s28 }
  0x1a   :  { %p2345_p10 = scmp.ne.s32.totalorder %s42_s28, %s2344_s29  ;;  %p2350_p12 = scmp.lt.s32.totalorder %s2344_s29, %s2344_s29 }
  0x1c   :  { %p2351_p13 = por %p2350_p12, %p2349_p11 }
  0x1e   :  { %p2352_p0 = pnand %p2351_p13, %p2345_p10 }
  0x20   :  { %2355 = shalt.err (!%p2352_p0)
}
  0x21   :  { %s2387_s1 = smov 128   ;;  %s2388_s30 = smov 8  }
  0x22   :  { %47 = dma.hbm_to_vmem [thread:$0]  %s2799_s2, 512, %s42_s28, [#allocation6], %s2387_s1, %s2387_s1, %s2388_s30  }
  0x23   :  { %2376 = dma.done.wait [#allocation3], 256  }
  0x24   :  { %2377 = vsyncadd [#allocation3], 4294967040 }
  0x25   :  { %2378 = dma.done.wait [#allocation6], 768  }
  0x26   :  { %2379 = vsyncadd [#allocation6], 4294966528  ;;  %v2389_v0 = vmov 0.0   ;;  %vm2390_vm0 = vmmov 0   ;;  %v2446_v1 = vld [vmem:[#allocation7 + $0x18] sm:$0xff]  ;;  %v2448_v2 = vld [vmem:[#allocation7 + $0x8] sm:$0xff] }
  0x27   :  { %2099 = vmatprep.subr.mxu0 %v2389_v0  ;;  %2110 = vmatprep.subr.mxu1 %v2389_v0  ;;  %s2391_s0 = smov 96   ;;  %v2452_v3 = vld [vmem:[#allocation7 + $0x10] sm:$0xff]  ;;  %v2456_v4 = vld [vmem:[#allocation7] sm:$0xff]  ;;  %v2465_v8 = vld [vmem:[#allocation2 + $0x8] sm:$0x3]  ;;  %vm95_vm1 = vcmask 1041409  }
  0x28   :  { %2107 = vmatprep.mubr.msk.f32.mxu0 %vm2390_vm0, %v2389_v0  ;;  %2118 = vmatprep.mubr.msk.f32.mxu1 %vm2390_vm0, %v2389_v0  ;;  %v2458_v5 = vld [vmem:[#allocation2 + $0x2] sm:$0x3]  ;;  %v2461_v6 = vld [vmem:[#allocation2 + $0x4] sm:$0x3]  ;;  %v2463_v7 = vld [vmem:[#allocation2 + $0x6] sm:$0x3] }
  0x29   :  { %220 = vrot.lane.b32.xlu0 %v2446_v1, %s2391_s0  ;;  %216 = vrot.lane.b32.xlu1 %v2448_v2, %s2391_s0  ;;  %v2468_v9 = vld [vmem:[#allocation2] sm:$0x3]  ;;  %v2470_v10 = vld [vmem:[#allocation2 + $0xa] sm:$0x3]  ;;  %v2473_v11 = vld [vmem:[#allocation2 + $0xc] sm:$0x3] }
  0x2a   :  { %2100 = vmatpush3.msra.mxu0 %v2446_v1  ;;  %v94_v12 = vrot.slane %v2458_v5, 7  ;;  %v97_v13 = vrot.slane %v2461_v6, 6  ;;  %vm98_vm2 = vcmask 1042434   ;;  %v100_v14 = vrot.slane %v2463_v7, 5  ;;  %v2482_v15 = vld [vmem:[#allocation2 + $0xe] sm:$0x3] }
  0x2b   :  { %2101 = vmatprep.subr.mxu0 %v2389_v0  ;;  %vm101_vm3 = vcmask 1043459   ;;  %v103_v16 = vrot.slane %v2465_v8, 4  ;;  %vm104_vm4 = vcmask 1044484   ;;  %v106_v18 = vrot.slane %v2470_v10, 3  ;;  %v2501_v25 = vld [vmem:[%s2800_s3] ss:$0 sm:$0xff] }
  0x2c   :  { %2102 = vmatpush3.msra.mxu0 %v2452_v3  ;;  %v96_v17 = vsel %vm95_vm1, %v94_v12, %v2468_v9  ;;  %vm107_vm5 = vcmask 1045509   ;;  %v109_v20 = vrot.slane %v2473_v11, 2  ;;  %vm110_vm6 = vcmask 1046534   ;;  %v2511_v28 = vld [vmem:[#allocation5 + $0x2] sm:$0x3]  ;;  %s2392_s3 = smov 120  }
  0x2d   :  { %218 = vrot.lane.b32.xlu0 %v2452_v3, %s2391_s0  ;;  %214 = vrot.lane.b32.xlu1 %v2456_v4, %s2391_s0  ;;  %v99_v19 = vsel %vm98_vm2, %v97_v13, %v96_v17  ;;  %v112_v22 = vrot.slane %v2482_v15, 1  ;;  %vm113_vm7 = vcmask 1047559   ;;  %vm115_vm8 = vcmask 261120   ;;  %v2513_v29 = vld [vmem:[#allocation5 + $0x4] sm:$0x3]  ;;  %s2393_s8 = smov 112  }
  0x2e   :  { %2103 = vmatprep.subr.mxu0 %v2389_v0  ;;  %v102_v21 = vsel %vm101_vm3, %v100_v14, %v99_v19  ;;  %v196_v30 = vrot.slane %v2511_v28, 7  ;;  %v2516_v31 = vld [vmem:[#allocation5] sm:$0x3]  ;;  %v2518_v32 = vld [vmem:[#allocation5 + $0x6] sm:$0x3]  ;;  %v198_v33 = vrot.slane %v2513_v29, 6 }
  0x2f   :  { %2104 = vmatpush3.msra.mxu0 %v2448_v2  ;;  %v105_v23 = vsel %vm104_vm4, %v103_v16, %v102_v21  ;;  %v2523_v35 = vld [vmem:[#allocation5 + $0x8] sm:$0x3]  ;;  %v200_v36 = vrot.slane %v2518_v32, 5  ;;  %v2527_v38 = vld [vmem:[#allocation5 + $0xa] sm:$0x3]  ;;  %s2394_s9 = smov 104  }
  0x30   :  { %2105 = vmatprep.subr.mxu0 %v2389_v0  ;;  %v108_v24 = vsel %vm107_vm5, %v106_v18, %v105_v23  ;;  %v197_v34 = vsel %vm95_vm1, %v196_v30, %v2516_v31  ;;  %v202_v39 = vrot.slane %v2523_v35, 4  ;;  %v2531_v41 = vld [vmem:[#allocation5 + $0xc] sm:$0x3]  ;;  %v204_v42 = vrot.slane %v2527_v38, 3  ;;  %v2539_v46 = vld [vmem:[#allocation5 + $0xe] sm:$0x3] }
  0x31   :  { %2106 = vmatpush3.msra.mxu0 %v2456_v4  ;;  %v111_v26 = vsel %vm110_vm6, %v109_v20, %v108_v24  ;;  %226 = vrot.lane.b32.xlu0 %v2501_v25, %s2391_s0  ;;  %v199_v37 = vsel %vm98_vm2, %v198_v33, %v197_v34  ;;  %v206_v47 = vrot.slane %v2531_v41, 2  ;;  %v208_v49 = vrot.slane %v2539_v46, 1  ;;  %s2395_s10 = smov 88   ;;  %s2396_s11 = smov 80  }
  0x32   :  { %2131 = vmatprep.subr.mxu0 %v2389_v0  ;;  %v114_v27 = vsel %vm113_vm7, %v112_v22, %v111_v26  ;;  %v201_v40 = vsel %vm101_vm3, %v200_v36, %v199_v37  ;;  %vm301_vm9 = vcmask 64512   ;;  %s2397_s12 = smov 72   ;;  %s2398_s13 = smov 16   ;;  %vm973_vm10 = vcmask 130048  }
  0x33   :  { %2108 = vmatmul.mubr.msk.f32.vlgmr.msra.gmra.mxu0 %vm115_vm8, %v114_v27  ;;  %v203_v43 = vsel %vm104_vm4, %v202_v39, %v201_v40  ;;  %s2399_s14 = smov 24   ;;  %vm975_vm11 = vcmask 195584   ;;  %s2400_s15 = smov [#allocation8]   ;;  %vm1988_vm12 = vcmask 523264  }
  0x34   :  { %2133 = vmatprep.mubr.msk.f32.mxu0 %vm2390_vm0, %v2389_v0  ;;  %v205_v48 = vsel %vm107_vm5, %v204_v42, %v203_v43  ;;  %s1996_s16 = sshll.u32 %s2400_s15, 4  ;;  %s1997_s16 = int_to_ptr.vmem [resolvable:$true] %s1996_s16 }
  0x35   :  { %v207_v51 = vsel %vm110_vm6, %v206_v47, %v205_v48  ;;  %s2356_s17 = scalar_lea.vmem %s1997_s16, 128  ;;  %p2361_p2 = scmp.lt.s32.totalorder %s1997_s16, %s1997_s16 }
  0x36   :  { %v209_v53 = vsel %vm113_vm7, %v208_v49, %v207_v51  ;;  %p2357_p1 = scmp.ne.s32.totalorder %s1997_s16, %s2356_s17  ;;  %p2362_p3 = scmp.lt.s32.totalorder %s2356_s17, %s2356_s17 }
  0x38   :  { %p2363_p4 = por %p2362_p3, %p2361_p2 }
  0x3a   :  { %p2364_p5 = pnand %p2363_p4, %p2357_p1 }
  0x9b   :  { %v2535_v44 = vpop.permute.xlu0 %220  ;;  %v2537_v45 = vpop.permute.xlu1 %216 }
  0x9c   :  { %2111 = vmatpush3.msra.mxu1 %v2535_v44 }
  0x9d   :  { %2112 = vmatprep.subr.mxu1 %v2389_v0 }
  0x9f   :  { %v2546_v50 = vpop.permute.xlu0 %218  ;;  %v2551_v52 = vpop.permute.xlu1 %214 }
  0xa0   :  { %2113 = vmatpush3.msra.mxu1 %v2546_v50 }
  0xa1   :  { %2114 = vmatprep.subr.mxu1 %v2389_v0 }
  0xa2   :  { %2115 = vmatpush3.msra.mxu1 %v2537_v45 }
  0xa3   :  { %2116 = vmatprep.subr.mxu1 %v2389_v0  ;;  %v2565_v57 = vpop.permute.xlu0 %226 }
  0xa4   :  { %2117 = vmatpush3.msra.mxu1 %v2551_v52 }
  0xa5   :  { %2119 = vmatmul.mubr.msk.f32.vlgmr.msra.gmra.mxu1 %vm115_vm8, %v209_v53  ;;  %2121 = vmatprep.subr.mxu1 %v2389_v0 }
  0xa6   :  { %2123 = vmatprep.mubr.msk.f32.mxu1 %vm2390_vm0, %v2389_v0 }
  0xf3   :  { %v184_v54 = vpop.f32.mrf.mxu0 }
  0xf4   :  { %v185_v55 = vadd.f32 %v2501_v25, %v184_v54 }
  0xf5   :  { %v2109_v56 = vpop.f32.mrf.mxu0 }
  0xf6   :  { %465 = vrot.lane.b32.xlu0 %v185_v55, %s2392_s3 }
  0xfa   :  { %630 = vrot.lane.b32.xlu0 %v185_v55, %s2393_s8 }
  0xfe   :  { %795 = vrot.lane.b32.xlu0 %v185_v55, %s2394_s9 }
 0x165   :  { %v297_v58 = vpop.f32.mrf.mxu1 }
 0x166   :  { %v2568_v59 = vadd.f32 %v297_v58, %v2565_v57 }
 0x167   :  { %v2120_v60 = vpop.f32.mrf.mxu1 }
 0x168   :  { %467 = vrot.lane.b32.xlu1 %v2568_v59, %s2392_s3  ;;  %2122 = vmatpush3.xpose.msk.msra.mxu1 %vm301_vm9, %v2568_v59  ;;  %v466_v61 = vpop.permute.xlu0 %465 }
 0x169   :  { %2126 = vmatprep.subr.mxu1 %v2389_v0 }
 0x16b   :  { %2124 = vmatmul.mubr.msk.f32.vlgmr.msra.gmra.mxu1 %vm301_vm9, %v185_v55 }
 0x16c   :  { %632 = vrot.lane.b32.xlu1 %v2568_v59, %s2393_s8  ;;  %2128 = vmatprep.mubr.msk.f32.mxu1 %vm2390_vm0, %v2389_v0  ;;  %v631_v12 = vpop.permute.xlu0 %630 }
 0x170   :  { %797 = vrot.lane.b32.xlu1 %v2568_v59, %s2394_s9  ;;  %v796_v14 = vpop.permute.xlu0 %795 }
 0x1da   :  { %v468_v62 = vpop.permute.xlu1 %467 }
 0x1db   :  { %2132 = vmatpush3.xpose.msk.msra.mxu0 %vm301_vm9, %v468_v62 }
 0x1dc   :  { %2141 = vmatprep.subr.mxu0 %v2389_v0 }
 0x1de   :  { %v633_v63 = vpop.permute.xlu1 %632  ;;  %2134 = vmatmul.mubr.msk.f32.vlgmr.msra.gmra.mxu0 %vm301_vm9, %v466_v61 }
 0x1df   :  { %2142 = vmatpush3.xpose.msk.msra.mxu0 %vm301_vm9, %v633_v63  ;;  %2143 = vmatprep.mubr.msk.f32.mxu0 %vm2390_vm0, %v2389_v0 }
 0x1e0   :  { %2151 = vmatprep.subr.mxu0 %v2389_v0 }
 0x1e2   :  { %v798_v13 = vpop.permute.xlu1 %797  ;;  %2144 = vmatmul.mubr.msk.f32.vlgmr.msra.gmra.mxu0 %vm301_vm9, %v631_v12 }
 0x1e3   :  { %2152 = vmatpush3.xpose.msk.msra.mxu0 %vm301_vm9, %v798_v13  ;;  %2153 = vmatprep.mubr.msk.f32.mxu0 %vm2390_vm0, %v2389_v0 }
 0x1e4   :  { %2161 = vmatprep.subr.mxu0 %v2389_v0 }
 0x1e6   :  { %2154 = vmatmul.mubr.msk.f32.vlgmr.msra.gmra.mxu0 %vm301_vm9, %v796_v14 }
 0x1e7   :  { %2169 = vmatprep.mubr.msk.f32.mxu0 %vm2390_vm0, %v2389_v0 }
 0x22b   :  { %v374_v16 = vpop.f32.mrf.mxu1 }
 0x22c   :  { %v378_v17 = vsel %vm301_vm9, %v374_v16, -inf }
 0x22d   :  { %379 = vmax.xlane.f32.xlu1 %v378_v17  ;;  %v2125_v18 = vpop.f32.mrf.mxu1 }
 0x29e   :  { %v539_v19 = vpop.f32.mrf.mxu0 }
 0x29f   :  { %v543_v20 = vsel %vm301_vm9, %v539_v19, -inf }
 0x2a0   :  { %544 = vmax.xlane.f32.xlu0 %v543_v20  ;;  %v2135_v21 = vpop.f32.mrf.mxu0 }
 0x2a2   :  { %v704_v22 = vpop.f32.mrf.mxu0 }
 0x2a3   :  { %v708_v23 = vsel %vm301_vm9, %v704_v22, -inf }
 0x2a4   :  { %709 = vmax.xlane.f32.xlu0 %v708_v23  ;;  %v2145_v24 = vpop.f32.mrf.mxu0 }
 0x2a6   :  { %v869_v26 = vpop.f32.mrf.mxu0 }
 0x2a7   :  { %v873_v27 = vsel %vm301_vm9, %v869_v26, -inf }
 0x2a8   :  { %874 = vmax.xlane.f32.xlu1 %v873_v27  ;;  %v2155_v30 = vpop.f32.mrf.mxu0 }
 0x2b6   :  { %v380_v33 = vpop.xlane.xlu1 %379 }
 0x2b7   :  { %v381_v34 = vsub.f32 %v374_v16, %v380_v33 }
 0x2b9   :  { %v382_v36 = vmul.f32 1.442695, %v381_v34  ;;  %554 = vrot.lane.b32.xlu1 %v2568_v59, %s2395_s10  ;;  %v1065_v34 = vrot.slane %v2468_v9, 1 }
 0x2bb   :  { %2264 = vpow2.f32 %v382_v36  ;;  %v1067_v36 = vrot.slane %v2461_v6, 7  ;;  %v1153_v6 = vrot.slane %v2513_v29, 7 }
 0x2c8   :  { %v2265_v37 = vpop.eup %2264 }
 0x2c9   :  { %v384_v39 = vsel %vm301_vm9, %v2265_v37, 0.0 }
 0x2ca   :  { %385 = vadd.xlane.f32.xlu0 %v384_v39  ;;  %v1071_v39 = vrot.slane %v2465_v8, 5 }
 0x2e0   :  { %389 = vrot.lane.b32.xlu0 %v2568_v59, %s2391_s0 }
 0x329   :  { %v545_v40 = vpop.xlane.xlu0 %544 }
 0x32a   :  { %v546_v42 = vsub.f32 %v539_v19, %v545_v40  ;;  %v1073_v40 = vrot.slane %v2470_v10, 4  ;;  %v1157_v10 = vrot.slane %v2523_v35, 5 }
 0x32c   :  { %v547_v43 = vmul.f32 1.442695, %v546_v42  ;;  %v1066_v42 = vsel %vm95_vm1, %v2458_v5, %v1065_v34 }
 0x32d   :  { %v710_v47 = vpop.xlane.xlu0 %709  ;;  %v1068_v9 = vsel %vm98_vm2, %v1067_v36, %v1066_v42 }
 0x32e   :  { %2266 = vpow2.f32 %v547_v43  ;;  %v711_v48 = vsub.f32 %v704_v22, %v710_v47  ;;  %v1075_v43 = vrot.slane %v2473_v11, 3  ;;  %v1151_v47 = vrot.slane %v2516_v31, 1 }
 0x32f   :  { %v1159_v11 = vrot.slane %v2527_v38, 4 }
 0x330   :  { %v712_v49 = vmul.f32 1.442695, %v711_v48  ;;  %v1077_v48 = vrot.slane %v2482_v15, 2  ;;  %v1161_v15 = vrot.slane %v2531_v41, 3 }
 0x331   :  { %v875_v51 = vpop.xlane.xlu1 %874 }
 0x332   :  { %2268 = vpow2.f32 %v712_v49  ;;  %v876_v53 = vsub.f32 %v869_v26, %v875_v51  ;;  %v1152_v51 = vsel %vm95_vm1, %v2511_v28, %v1151_v47 }
 0x334   :  { %v877_v54 = vmul.f32 1.442695, %v876_v53  ;;  %v1154_v53 = vsel %vm98_vm2, %v1153_v6, %v1152_v51 }
 0x335   :  { %v555_v16 = vpop.permute.xlu1 %554 }
 0x336   :  { %2270 = vpow2.f32 %v877_v54 }
 0x33b   :  { %v2267_v55 = vpop.eup %2266 }
 0x33c   :  { %v549_v56 = vsel %vm301_vm9, %v2267_v55, 0.0 }
 0x33d   :  { %550 = vadd.xlane.f32.xlu1 %v549_v56 }
 0x33f   :  { %v2269_v58 = vpop.eup %2268 }
 0x340   :  { %v714_v60 = vsel %vm301_vm9, %v2269_v58, 0.0 }
 0x341   :  { %715 = vadd.xlane.f32.xlu0 %v714_v60 }
 0x343   :  { %v2271_v61 = vpop.eup %2270 }
 0x344   :  { %v879_v62 = vsel %vm301_vm9, %v2271_v61, 0.0 }
 0x345   :  { %880 = vadd.xlane.f32.xlu1 %v879_v62 }
 0x353   :  { %v386_v63 = vpop.xlane.xlu0 %385 }
 0x354   :  { %2272 = vrcp.f32 %v386_v63 }
 0x356   :  { %719 = vrot.lane.b32.xlu1 %v2568_v59, %s2396_s11 }
 0x357   :  { %884 = vrot.lane.b32.xlu0 %v2568_v59, %s2397_s12  ;;  %v390_v12 = vpop.permute.xlu0 %389 }
 0x358   :  { %2127 = vmatpush3.msra.mxu1 %v390_v12 }
 0x359   :  { %2136 = vmatprep.subr.mxu1 %v2389_v0 }
 0x35a   :  { %983 = vrot.lane.b32.xlu1 %v2446_v1, %s2384_s20 }
 0x35b   :  { %981 = vrot.lane.b32.xlu0 %v2452_v3, %s2384_s20 }
 0x35e   :  { %979 = vrot.lane.b32.xlu1 %v2448_v2, %s2384_s20 }
 0x361   :  { %v2273_v13 = vpop.eup %2272 }
 0x362   :  { %v388_v14 = vmul.f32 %v2273_v13, %v2265_v37  ;;  %v1069_v37 = vrot.slane %v2463_v7, 6  ;;  %v1155_v7 = vrot.slane %v2518_v32, 6  ;;  %v1163_v32 = vrot.slane %v2539_v46, 2 }
 0x364   :  { %2129 = vmatmul.mubr.msk.f32.vlgmr.msra.gmra.mxu1 %vm301_vm9, %v388_v14  ;;  %v1070_v49 = vsel %vm101_vm3, %v1069_v37, %v1068_v9  ;;  %v1156_v35 = vsel %vm101_vm3, %v1155_v7, %v1154_v53 }
 0x365   :  { %2137 = vmatpush3.msra.mxu1 %v555_v16  ;;  %2138 = vmatprep.mubr.msk.f32.mxu1 %vm2390_vm0, %v2389_v0  ;;  %v1072_v8 = vsel %vm104_vm4, %v1071_v39, %v1070_v49  ;;  %v1158_v38 = vsel %vm104_vm4, %v1157_v10, %v1156_v35 }
 0x366   :  { %2146 = vmatprep.subr.mxu1 %v2389_v0  ;;  %v1074_v5 = vsel %vm107_vm5, %v1073_v40, %v1072_v8  ;;  %v1160_v41 = vsel %vm107_vm5, %v1159_v11, %v1158_v38 }
 0x367   :  { %v1076_v31 = vsel %vm110_vm6, %v1075_v43, %v1074_v5 }
 0x368   :  { %v1078_v29 = vsel %vm113_vm7, %v1077_v48, %v1076_v31 }
 0x3c6   :  { %v551_v59 = vpop.xlane.xlu1 %550 }
 0x3c7   :  { %2274 = vrcp.f32 %v551_v59 }
 0x3ca   :  { %v716_v17 = vpop.xlane.xlu0 %715 }
 0x3cb   :  { %2276 = vrcp.f32 %v716_v17 }
 0x3ce   :  { %v881_v18 = vpop.xlane.xlu1 %880  ;;  %v885_v24 = vpop.permute.xlu0 %884 }
 0x3cf   :  { %2278 = vrcp.f32 %v881_v18 }
 0x3d2   :  { %v720_v21 = vpop.permute.xlu1 %719 }
 0x3d4   :  { %v2275_v19 = vpop.eup %2274 }
 0x3d5   :  { %v553_v20 = vmul.f32 %v2275_v19, %v2267_v55  ;;  %v1162_v55 = vsel %vm110_vm6, %v1161_v15, %v1160_v41 }
 0x3d6   :  { %v2643_v30 = vpop.permute.xlu1 %983  ;;  %v1164_v46 = vsel %vm113_vm7, %v1163_v32, %v1162_v55 }
 0x3d7   :  { %2139 = vmatmul.mubr.msk.f32.vlgmr.msra.gmra.mxu1 %vm301_vm9, %v553_v20  ;;  %2162 = vmatpush3.msra.mxu0 %v2643_v30 }
 0x3d8   :  { %v2277_v22 = vpop.eup %2276  ;;  %2147 = vmatpush3.msra.mxu1 %v720_v21  ;;  %2148 = vmatprep.mubr.msk.f32.mxu1 %vm2390_vm0, %v2389_v0 }
 0x3d9   :  { %2156 = vmatprep.subr.mxu1 %v2389_v0  ;;  %v718_v23 = vmul.f32 %v2277_v22, %v2269_v58  ;;  %2163 = vmatprep.subr.mxu0 %v2389_v0 }
 0x3db   :  { %2149 = vmatmul.mubr.msk.f32.vlgmr.msra.gmra.mxu1 %vm301_vm9, %v718_v23 }
 0x3dc   :  { %v2279_v26 = vpop.eup %2278  ;;  %2157 = vmatpush3.msra.mxu1 %v885_v24  ;;  %2158 = vmatprep.mubr.msk.f32.mxu1 %vm2390_vm0, %v2389_v0 }
 0x3dd   :  { %v883_v27 = vmul.f32 %v2279_v26, %v2271_v61  ;;  %2172 = vmatprep.subr.mxu1 %v2389_v0 }
 0x3df   :  { %2159 = vmatmul.mubr.msk.f32.vlgmr.msra.gmra.mxu1 %vm301_vm9, %v883_v27 }
 0x3e0   :  { %2173 = vmatpush3.msra.mxu1 %v2446_v1  ;;  %2180 = vmatprep.mubr.msk.f32.mxu1 %vm2390_vm0, %v2389_v0  ;;  %v2646_v1 = vpop.permute.xlu0 %981 }
 0x3e1   :  { %2174 = vmatprep.subr.mxu1 %v2389_v0  ;;  %2164 = vmatpush3.msra.mxu0 %v2646_v1 }
 0x3e2   :  { %2175 = vmatpush3.msra.mxu1 %v2452_v3  ;;  %2165 = vmatprep.subr.mxu0 %v2389_v0  ;;  %v2651_v3 = vpop.permute.xlu1 %979 }
 0x3e3   :  { %2176 = vmatprep.subr.mxu1 %v2389_v0  ;;  %2166 = vmatpush3.msra.mxu0 %v2651_v3 }
 0x3e4   :  { %2177 = vmatpush3.msra.mxu1 %v2448_v2  ;;  %2167 = vmatprep.subr.mxu0 %v2389_v0 }
 0x3e5   :  { %2178 = vmatprep.subr.mxu1 %v2389_v0 }
 0x3e6   :  { %2179 = vmatpush3.msra.mxu1 %v2456_v4 }
 0x3e7   :  { %2194 = vmatprep.subr.mxu1 %v2389_v0  ;;  %2181 = vmatmul.mubr.msk.f32.vlgmr.msra.gmra.mxu1 %vm115_vm8, %v1078_v29 }
 0x3e8   :  { %2196 = vmatprep.mubr.msk.f32.mxu1 %vm2390_vm0, %v2389_v0 }
 0x424   :  { %v461_v33 = vpop.f32.mrf.mxu1 }
 0x426   :  { %v2130_v2 = vpop.f32.mrf.mxu1 }
 0x497   :  { %v626_v54 = vpop.f32.mrf.mxu1 }
 0x498   :  { %961 = vrot.lane.b32.xlu0 %v626_v54, %s2388_s30 }
 0x499   :  { %v2140_v28 = vpop.f32.mrf.mxu1 }
 0x49b   :  { %v791_v56 = vpop.f32.mrf.mxu1 }
 0x49c   :  { %965 = vrot.lane.b32.xlu1 %v791_v56, %s2398_s13  ;;  %977 = vrot.lane.b32.xlu0 %v2456_v4, %s2384_s20 }
 0x49d   :  { %v2150_v58 = vpop.f32.mrf.mxu1 }
 0x49f   :  { %v956_v60 = vpop.f32.mrf.mxu1 }
 0x4a0   :  { %969 = vrot.lane.b32.xlu1 %v956_v60, %s2399_s14 }
 0x4a1   :  { %v2160_v61 = vpop.f32.mrf.mxu1 }
 0x50a   :  { %v962_v62 = vpop.permute.xlu0 %961 }
 0x50b   :  { %v972_v13 = vsel %vm301_vm9, %v461_v33, %v962_v62 }
 0x50e   :  { %v966_v63 = vpop.permute.xlu1 %965  ;;  %v978_v12 = vpop.permute.xlu0 %977 }
 0x50f   :  { %2168 = vmatpush3.msra.mxu0 %v978_v12  ;;  %v974_v14 = vsel %vm973_vm10, %v972_v13, %v966_v63 }
 0x510   :  { %2183 = vmatprep.subr.mxu0 %v2389_v0 }
 0x512   :  { %v970_v16 = vpop.permute.xlu1 %969 }
 0x513   :  { %v976_v4 = vsel %vm975_vm11, %v974_v14, %v970_v16 }
 0x514   :  { %2170 = vmatmul.mubr.msk.f32.vlgmr.msra.gmra.mxu0 %vm115_vm8, %v976_v4 }
 0x515   :  { %2184 = vmatpush3.msra.mxu0 %v2535_v44  ;;  %2191 = vmatprep.mubr.msk.f32.mxu0 %vm2390_vm0, %v2389_v0  ;;  %v1147_v44 = vpop.f32.mrf.mxu1 }
 0x516   :  { %2185 = vmatprep.subr.mxu0 %v2389_v0  ;;  %v1148_v59 = vadd.f32 %v2501_v25, %v1147_v44 }
 0x517   :  { %2186 = vmatpush3.msra.mxu0 %v2546_v50  ;;  %v2182_v17 = vpop.f32.mrf.mxu1 }
 0x518   :  { %2187 = vmatprep.subr.mxu0 %v2389_v0  ;;  %1400 = vrot.lane.b32.xlu1 %v1148_v59, %s2392_s3 }
 0x519   :  { %2188 = vmatpush3.msra.mxu0 %v2537_v45 }
 0x51a   :  { %2189 = vmatprep.subr.mxu0 %v2389_v0 }
 0x51b   :  { %2190 = vmatpush3.msra.mxu0 %v2551_v52 }
 0x51c   :  { %2192 = vmatmul.mubr.msk.f32.vlgmr.msra.gmra.mxu0 %vm115_vm8, %v1164_v46  ;;  %2204 = vmatprep.subr.mxu0 %v2389_v0 }
 0x51d   :  { %2206 = vmatprep.mubr.msk.f32.mxu0 %vm2390_vm0, %v2389_v0  ;;  %1565 = vrot.lane.b32.xlu1 %v1148_v59, %s2393_s8 }
 0x521   :  { %1730 = vrot.lane.b32.xlu1 %v1148_v59, %s2394_s9 }
 0x5d4   :  { %v2715_v45 = vpop.f32.mrf.mxu0 }
 0x5d6   :  { %v2171_v50 = vpop.f32.mrf.mxu0 }
 0x5dc   :  { %v1233_v52 = vpop.f32.mrf.mxu0 }
 0x5dd   :  { %v2718_v18 = vadd.f32 %v1233_v52, %v2565_v57  ;;  %v1401_v57 = vpop.permute.xlu1 %1400 }
 0x5de   :  { %v2193_v19 = vpop.f32.mrf.mxu0 }
 0x5df   :  { %1402 = vrot.lane.b32.xlu0 %v2718_v18, %s2392_s3  ;;  %2195 = vmatpush3.xpose.msk.msra.mxu1 %vm301_vm9, %v2718_v18 }
 0x5e0   :  { %2199 = vmatprep.subr.mxu1 %v2389_v0 }
 0x5e1   :  { %v1566_v22 = vpop.permute.xlu1 %1565 }
 0x5e2   :  { %2197 = vmatmul.mubr.msk.f32.vlgmr.msra.gmra.mxu1 %vm301_vm9, %v1148_v59 }
 0x5e3   :  { %1567 = vrot.lane.b32.xlu0 %v2718_v18, %s2393_s8  ;;  %2201 = vmatprep.mubr.msk.f32.mxu1 %vm2390_vm0, %v2389_v0 }
 0x5e5   :  { %v1731_v24 = vpop.permute.xlu1 %1730 }
 0x5e7   :  { %1732 = vrot.lane.b32.xlu0 %v2718_v18, %s2394_s9 }
 0x651   :  { %v1403_v20 = vpop.permute.xlu0 %1402 }
 0x652   :  { %2205 = vmatpush3.xpose.msk.msra.mxu0 %vm301_vm9, %v1403_v20 }
 0x653   :  { %2214 = vmatprep.subr.mxu0 %v2389_v0 }
 0x655   :  { %2207 = vmatmul.mubr.msk.f32.vlgmr.msra.gmra.mxu0 %vm301_vm9, %v1401_v57  ;;  %v1568_v21 = vpop.permute.xlu0 %1567 }
 0x656   :  { %2215 = vmatpush3.xpose.msk.msra.mxu0 %vm301_vm9, %v1568_v21  ;;  %2216 = vmatprep.mubr.msk.f32.mxu0 %vm2390_vm0, %v2389_v0 }
 0x657   :  { %2224 = vmatprep.subr.mxu0 %v2389_v0 }
 0x659   :  { %2217 = vmatmul.mubr.msk.f32.vlgmr.msra.gmra.mxu0 %vm301_vm9, %v1566_v22  ;;  %v1733_v23 = vpop.permute.xlu0 %1732 }
 0x65a   :  { %2225 = vmatpush3.xpose.msk.msra.mxu0 %vm301_vm9, %v1733_v23  ;;  %2226 = vmatprep.mubr.msk.f32.mxu0 %vm2390_vm0, %v2389_v0 }
 0x65b   :  { %2234 = vmatprep.subr.mxu0 %v2389_v0 }
 0x65d   :  { %2227 = vmatmul.mubr.msk.f32.vlgmr.msra.gmra.mxu0 %vm301_vm9, %v1731_v24 }
 0x65e   :  { %2235 = vmatpush3.msra.mxu0 %v2643_v30  ;;  %2242 = vmatprep.mubr.msk.f32.mxu0 %vm2390_vm0, %v2389_v0 }
 0x65f   :  { %2236 = vmatprep.subr.mxu0 %v2389_v0 }
 0x660   :  { %2237 = vmatpush3.msra.mxu0 %v2646_v1 }
 0x661   :  { %2238 = vmatprep.subr.mxu0 %v2389_v0 }
 0x662   :  { %2239 = vmatpush3.msra.mxu0 %v2651_v3 }
 0x663   :  { %2240 = vmatprep.subr.mxu0 %v2389_v0 }
 0x664   :  { %2241 = vmatpush3.msra.mxu0 %v978_v12 }
 0x6a2   :  { %v1309_v26 = vpop.f32.mrf.mxu1 }
 0x6a3   :  { %v1313_v27 = vsel %vm301_vm9, %v1309_v26, -inf }
 0x6a4   :  { %1314 = vmax.xlane.f32.xlu0 %v1313_v27  ;;  %v2198_v33 = vpop.f32.mrf.mxu1 }
 0x715   :  { %v1474_v30 = vpop.f32.mrf.mxu0 }
 0x716   :  { %v1478_v2 = vsel %vm301_vm9, %v1474_v30, -inf }
 0x717   :  { %1479 = vmax.xlane.f32.xlu1 %v1478_v2  ;;  %v2208_v34 = vpop.f32.mrf.mxu0 }
 0x719   :  { %v1639_v36 = vpop.f32.mrf.mxu0 }
 0x71a   :  { %v1643_v1 = vsel %vm301_vm9, %v1639_v36, -inf }
 0x71b   :  { %1644 = vmax.xlane.f32.xlu0 %v1643_v1  ;;  %v2218_v37 = vpop.f32.mrf.mxu0 }
 0x71d   :  { %v1804_v39 = vpop.f32.mrf.mxu0 }
 0x71e   :  { %v1808_v3 = vsel %vm301_vm9, %v1804_v39, -inf }
 0x71f   :  { %1809 = vmax.xlane.f32.xlu0 %v1808_v3  ;;  %v2228_v40 = vpop.f32.mrf.mxu0 }
 0x728   :  { %1324 = vrot.lane.b32.xlu1 %v2718_v18, %s2391_s0 }
 0x72d   :  { %v1315_v42 = vpop.xlane.xlu0 %1314 }
 0x72e   :  { %v1316_v43 = vsub.f32 %v1309_v26, %v1315_v42 }
 0x730   :  { %v1317_v47 = vmul.f32 1.442695, %v1316_v43 }
 0x732   :  { %2280 = vpow2.f32 %v1317_v47 }
 0x73f   :  { %v2281_v9 = vpop.eup %2280 }
 0x740   :  { %v1319_v48 = vsel %vm301_vm9, %v2281_v9, 0.0 }
 0x74c   :  { %1320 = vadd.xlane.f32.xlu1 %v1319_v48 }
 0x7a0   :  { %v1480_v6 = vpop.xlane.xlu1 %1479 }
 0x7a1   :  { %v1481_v49 = vsub.f32 %v1474_v30, %v1480_v6 }
 0x7a3   :  { %v1482_v7 = vmul.f32 1.442695, %v1481_v49 }
 0x7a4   :  { %v1325_v8 = vpop.permute.xlu1 %1324  ;;  %v1645_v10 = vpop.xlane.xlu0 %1644 }
 0x7a5   :  { %2282 = vpow2.f32 %v1482_v7  ;;  %v1646_v5 = vsub.f32 %v1639_v36, %v1645_v10  ;;  %2200 = vmatpush3.msra.mxu1 %v1325_v8 }
 0x7a6   :  { %2209 = vmatprep.subr.mxu1 %v2389_v0 }
 0x7a7   :  { %v1647_v11 = vmul.f32 1.442695, %v1646_v5 }
 0x7a8   :  { %v1810_v31 = vpop.xlane.xlu0 %1809 }
 0x7a9   :  { %2284 = vpow2.f32 %v1647_v11  ;;  %v1811_v51 = vsub.f32 %v1804_v39, %v1810_v31 }
 0x7ab   :  { %v1812_v15 = vmul.f32 1.442695, %v1811_v51 }
 0x7ad   :  { %2286 = vpow2.f32 %v1812_v15 }
 0x7b2   :  { %v2283_v29 = vpop.eup %2282 }
 0x7b3   :  { %v1484_v53 = vsel %vm301_vm9, %v2283_v29, 0.0 }
 0x7b4   :  { %1485 = vadd.xlane.f32.xlu0 %v1484_v53 }
 0x7b6   :  { %v2285_v32 = vpop.eup %2284 }
 0x7b7   :  { %v1649_v54 = vsel %vm301_vm9, %v2285_v32, 0.0 }
 0x7b8   :  { %1650 = vadd.xlane.f32.xlu1 %v1649_v54 }
 0x7ba   :  { %v2287_v35 = vpop.eup %2286 }
 0x7bb   :  { %v1814_v38 = vsel %vm301_vm9, %v2287_v35, 0.0 }
 0x7bc   :  { %1815 = vadd.xlane.f32.xlu0 %v1814_v38 }
 0x7c9   :  { %1654 = vrot.lane.b32.xlu1 %v2718_v18, %s2396_s11 }
 0x7cd   :  { %1819 = vrot.lane.b32.xlu1 %v2718_v18, %s2397_s12 }
 0x7d2   :  { %1489 = vrot.lane.b32.xlu0 %v2718_v18, %s2395_s10 }
 0x7d5   :  { %v1321_v28 = vpop.xlane.xlu1 %1320 }
 0x7d6   :  { %2288 = vrcp.f32 %v1321_v28 }
 0x7e3   :  { %v2289_v41 = vpop.eup %2288 }
 0x7e4   :  { %v1323_v55 = vmul.f32 %v2289_v41, %v2281_v9 }
 0x7e6   :  { %2202 = vmatmul.mubr.msk.f32.vlgmr.msra.gmra.mxu1 %vm301_vm9, %v1323_v55 }
 0x7e7   :  { %2211 = vmatprep.mubr.msk.f32.mxu1 %vm2390_vm0, %v2389_v0 }
 0x83d   :  { %v1486_v56 = vpop.xlane.xlu0 %1485 }
 0x83e   :  { %2290 = vrcp.f32 %v1486_v56 }
 0x841   :  { %v1651_v46 = vpop.xlane.xlu1 %1650 }
 0x842   :  { %2292 = vrcp.f32 %v1651_v46 }
 0x845   :  { %v1816_v58 = vpop.xlane.xlu0 %1815  ;;  %v1655_v62 = vpop.permute.xlu1 %1654 }
 0x846   :  { %2294 = vrcp.f32 %v1816_v58 }
 0x849   :  { %v1490_v60 = vpop.permute.xlu0 %1489  ;;  %v1820_v14 = vpop.permute.xlu1 %1819 }
 0x84a   :  { %2210 = vmatpush3.msra.mxu1 %v1490_v60 }
 0x84b   :  { %v2291_v61 = vpop.eup %2290  ;;  %2219 = vmatprep.subr.mxu1 %v2389_v0 }
 0x84c   :  { %v1488_v63 = vmul.f32 %v2291_v61, %v2283_v29 }
 0x84e   :  { %2212 = vmatmul.mubr.msk.f32.vlgmr.msra.gmra.mxu1 %vm301_vm9, %v1488_v63 }
 0x84f   :  { %v2293_v12 = vpop.eup %2292  ;;  %2220 = vmatpush3.msra.mxu1 %v1655_v62  ;;  %2221 = vmatprep.mubr.msk.f32.mxu1 %vm2390_vm0, %v2389_v0 }
 0x850   :  { %2229 = vmatprep.subr.mxu1 %v2389_v0  ;;  %v1653_v13 = vmul.f32 %v2293_v12, %v2285_v32 }
 0x852   :  { %2222 = vmatmul.mubr.msk.f32.vlgmr.msra.gmra.mxu1 %vm301_vm9, %v1653_v13 }
 0x853   :  { %v2295_v16 = vpop.eup %2294  ;;  %2230 = vmatpush3.msra.mxu1 %v1820_v14  ;;  %2231 = vmatprep.mubr.msk.f32.mxu1 %vm2390_vm0, %v2389_v0 }
 0x854   :  { %v1818_v4 = vmul.f32 %v2295_v16, %v2287_v35 }
 0x856   :  { %2232 = vmatmul.mubr.msk.f32.vlgmr.msra.gmra.mxu1 %vm301_vm9, %v1818_v4 }
 0x8a6   :  { %v1396_v44 = vpop.f32.mrf.mxu1 }
 0x8a8   :  { %v2203_v59 = vpop.f32.mrf.mxu1 }
 0x90e   :  { %v1561_v17 = vpop.f32.mrf.mxu1 }
 0x90f   :  { %1896 = vrot.lane.b32.xlu0 %v1561_v17, %s2388_s30 }
 0x910   :  { %v2213_v50 = vpop.f32.mrf.mxu1 }
 0x912   :  { %v1726_v52 = vpop.f32.mrf.mxu1 }
 0x913   :  { %1900 = vrot.lane.b32.xlu1 %v1726_v52, %s2398_s13 }
 0x914   :  { %v2223_v18 = vpop.f32.mrf.mxu1 }
 0x916   :  { %v1891_v19 = vpop.f32.mrf.mxu1 }
 0x917   :  { %989 = vrot.lane.b32.xlu1 %v2501_v25, %s2384_s20  ;;  %1904 = vrot.lane.b32.xlu0 %v1891_v19, %s2399_s14 }
 0x918   :  { %v2233_v0 = vpop.f32.mrf.mxu1 }
 0x981   :  { %v1897_v57 = vpop.permute.xlu0 %1896 }
 0x982   :  { %v1907_v21 = vsel %vm301_vm9, %v1396_v44, %v1897_v57 }
 0x985   :  { %v1901_v20 = vpop.permute.xlu1 %1900 }
 0x986   :  { %v1908_v22 = vsel %vm973_vm10, %v1907_v21, %v1901_v20 }
 0x989   :  { %v1905_v23 = vpop.permute.xlu0 %1904  ;;  %v990_v26 = vpop.permute.xlu1 %989 }
 0x98a   :  { %v1909_v24 = vsel %vm975_vm11, %v1908_v22, %v1905_v23  ;;  %v1062_v25 = vadd.f32 %v2715_v45, %v990_v26 }
 0x98b   :  { %2243 = vmatmul.mubr.msk.f32.vlgmr.msra.gmra.mxu0 %vm115_vm8, %v1909_v24 }
 0xa4b   :  { %v1979_v27 = vpop.f32.mrf.mxu0 }
 0xa4c   :  { %v1980_v33 = vadd.f32 %v1979_v27, %v990_v26 }
 0xa4d   :  { %v2244_v30 = vpop.f32.mrf.mxu0 }
 0xa4e   :  { %1984 = vrot.lane.b32.xlu0 %v1980_v33, %s2384_s20 }
 0xac0   :  { %v1985_v2 = vpop.permute.xlu0 %1984 }
 0xac1   :  { %v1987_v34 = vsel %vm115_vm8, %v1062_v25, %v1985_v2 }
 0xac2   :  { %1989 = vst.msk [vmem:[#allocation8] sm:$0xff] %vm1988_vm12, %v1987_v34 }
 0xac3   :  { %2367 = shalt.err (!%p2364_p5)
}
 0xac4   :  { %1999 = dma.vmem_to_hbm [thread:$0]  %s1997_s16, 128, %s2801_s4, [#allocation4]  }
 0xac5   :  { %2380 = dma.done.wait [#allocation4], 128  }
 0xac6   :  { %2381 = vsyncadd [#allocation4], 4294967168 }
 0xac7   :  { %2003 = vsyncpa [#allocation3], 1 }
 0xac8   :  { %2004 = vsyncpa [#allocation6], 1 }
 0xac9   :  { %2005 = vsyncpa [#allocation4], 1 }

</bundles_post_ra>
